<compile_context>
chip_gen: v6e
topology: v6e:2x2x1
jax: 0.10.0
libtpu: 0.0.40
codegen_flags: <defaults>
</compile_context>

<pallas_src>
import functools

import jax
import jax.numpy as jnp
from jax import lax
from jax.experimental import pallas as pl
from jax.experimental.pallas import tpu as pltpu

BN_EPS = 1e-5          # nn.BatchNorm2d default eps
LEAKY_SLOPE = 0.01     # F.leaky_relu default negative_slope
NAMDA = 0.5            # Pool_Generator default namda


def _leaky_relu(t):
    return jnp.where(t >= 0, t, LEAKY_SLOPE * t)


def _tpu_vmem_cap_bytes():
    """Per-chip cap on requested VMEM, leaving headroom for compiler scratch.

    v7x has 64 MiB/TC (cap at 48 MiB); v5e/v6e have 128 MiB (allow up to ~100 MiB).
    """
    try:
        phys = int(pltpu.get_tpu_info().vmem_capacity_bytes)
    except Exception:
        phys = 64 << 20
    return (48 << 20) if phys <= (64 << 20) else (100 << 20)


def _pick_block_batch(batch, per_batch_bytes, resident_bytes, vmem_cap):
    """Largest divisor of `batch` whose (double-buffered) blocks fit the VMEM budget,
    while keeping the grid length >= 2 so v7x's two TensorCores both get work."""
    budget = vmem_cap - 2 * resident_bytes - (4 << 20)
    max_bb = max(1, budget // (3 * per_batch_bytes)) if budget > 0 else 1
    max_bb = int(min(max_bb, max(1, batch // 2)))
    bb = 1
    for cand in range(1, batch + 1):
        if batch % cand == 0 and cand <= max_bb:
            bb = cand
    return bb


# --------------------------- kernel A: R, Y = Xp@Wg, BN moments ---------------------------
def _r_pool_kernel(stats_ref, x_ref, wr_ref, wg_ref, r_ref, y_ref, pstats_ref,
                   *, mxu_dtype, approx_softmax):
    """Bb batch slices:
         R      = softmax(leaky_relu(BN(x) @ Wr))
         X_pool = R^T @ x                      (stays in VMEM, never hits HBM)
         Y      = X_pool @ Wg                  (BN folded into an affine in kernel B)
         pstats = per-block centered moments of X_pool (Chan-combined in XLA)."""
    mu = stats_ref[0]        # whole-tensor BN mean of x (SMEM scalar)
    inv_std = stats_ref[1]   # whole-tensor BN 1/sqrt(var+eps)

    bb, n, d = x_ref.shape
    m = wr_ref.shape[1]

    x = x_ref[...].astype(jnp.float32)                     # (Bb, N, D)
    xn = (x - mu) * inv_std                                # training-mode BatchNorm2d(1)

    # k=1, head=1 -> identity adjacency support: one tall (Bb*N, D) @ (D, M) MXU matmul.
    logits = _leaky_relu(
        jnp.dot(xn.reshape(bb * n, d).astype(mxu_dtype),
                wr_ref[...].astype(mxu_dtype),
                preferred_element_type=jnp.float32))       # (Bb*N, M)

    # Softmax over M; EUP reciprocal on the fast path, exact on the parity path.
    mx = jnp.max(logits, axis=-1, keepdims=True)
    e = jnp.exp(logits - mx)
    r2 = e * pl.reciprocal(jnp.sum(e, axis=-1, keepdims=True), approx=approx_softmax)
    r = r2.reshape(bb, n, m)
    # NOTE: at production sizes (N_next, D >= 128) these stores are lane-dense; at the
    # tiny test sizes the last dims are below 128 and partial stores are unavoidable
    # without changing the semantic layout of R / x_out.
    r_ref[...] = r.astype(r_ref.dtype)

    # X_pool = R^T @ x per batch slice (kept resident).
    xp = jnp.einsum('bnm,bnd->bmd', r.astype(mxu_dtype), x.astype(mxu_dtype),
                    preferred_element_type=jnp.float32)    # (Bb, M, D)

    # Y = X_pool @ Wg computed here where the operand is already in VMEM.
    y = jnp.dot(xp.reshape(bb * m, d).astype(mxu_dtype),
                wg_ref[...].astype(mxu_dtype),
                preferred_element_type=jnp.float32)        # (Bb*M, Dout)
    y_ref[...] = y.reshape(bb, m, -1).astype(y_ref.dtype)

    # Per-block centered moments of X_pool for the second BatchNorm2d(1).
    cnt = bb * m * d
    mean_b = jnp.sum(xp) * (1.0 / cnt)
    m2_b = jnp.sum(jnp.square(xp - mean_b))
    lane = lax.broadcasted_iota(jnp.int32, pstats_ref.shape, 2)
    pstats_ref[...] = jnp.where(lane == 0, mean_b,
                                jnp.where(lane == 1, m2_b, 0.0)).astype(pstats_ref.dtype)


# --------------------- kernel B: folded-BN affine + unpool + residual ---------------------
def _unpool_kernel(affine_ref, x_ref, r_ref, y_ref, out_ref, *, namda, mxu_dtype):
    """Bb batch slices:
         Xg    = leaky_relu(BN(X_pool) @ Wg) = leaky_relu(inv_std*Y - mu*inv_std*colsum(Wg))
         x_out = namda * (R @ Xg) + x          (aliased in place onto x)."""
    x = x_ref[...].astype(jnp.float32)                     # (Bb, N, D)
    r = r_ref[...].astype(jnp.float32)                     # (Bb, N, M)
    y = y_ref[...].astype(jnp.float32)                     # (Bb, M, Dout)

    aff = affine_ref[...]                                  # (2, Dout)
    d_out = aff.shape[-1]
    scale = aff[0:1, :].reshape(1, 1, d_out)               # inv_std_p
    bias = aff[1:2, :].reshape(1, 1, d_out)                # mu_p * inv_std_p * colsum(Wg)

    xg = _leaky_relu(y * scale - bias)                     # (Bb, M, Dout)
    xu = jnp.einsum('bnm,bmd->bnd', r.astype(mxu_dtype), xg.astype(mxu_dtype),
                    preferred_element_type=jnp.float32)    # (Bb, N, Dout)
    out_ref[...] = (xu * namda + x).astype(out_ref.dtype)


def pool_generator(x, L, w_r, w_g, namda=NAMDA, *,
                   mxu_dtype=jnp.bfloat16, approx_softmax=True, k=1, head=1):
    """Forward of Pool_Generator (module defaults k=1, head=1).

    x: (B, N, D); L: (B, 1, N, N); w_r: (D, N_next); w_g: (D, Dout == D).
    mxu_dtype=jnp.bfloat16 (default) feeds bf16 operands to the MXU with f32
    accumulation; pass jnp.float32 (+ approx_softmax=False) for tight parity with the
    PyTorch reference numerics.
    """
    if k != 1 or head != 1:
        # generate_adj(K=1) yields only the identity support, so L / BatchAdjNorm are
        # dead code for the defaults; other settings are not implemented here.
        raise NotImplementedError("pool_generator implements the k=1, head=1 defaults only")
    del L  # identity-only adjacency support: L cannot affect (x_out, R)

    f32 = jnp.float32
    x = x.astype(f32)
    w_r = w_r.astype(f32)
    w_g = w_g.astype(f32)
    B, N, D = x.shape
    M = w_r.shape[1]
    Dout = w_g.shape[1]
    if Dout != D:
        raise ValueError("x_out = namda * unpool + x requires GNN_out_dim == GNN_in")

    vmem_cap = _tpu_vmem_cap_bytes()
    per_batch_bytes = 4 * (N * D + N * M + M * D + M * Dout + N * Dout)
    resident_bytes = 4 * (D * M + D * Dout + 2 * Dout + 128)
    Bb = _pick_block_batch(B, per_batch_bytes, resident_bytes, vmem_cap)
    G = B // Bb

    # Whole-tensor training-mode BatchNorm2d(1) stats of x (two-pass, centered),
    # passed as SMEM scalars so per-batch blocking keeps the global-BN semantics.
    mu_x = jnp.mean(x)
    var_x = jnp.mean(jnp.square(x - mu_x))
    stats_x = jnp.stack([mu_x, lax.rsqrt(var_x + BN_EPS)]).astype(f32)

    kern_a = functools.partial(_r_pool_kernel, mxu_dtype=mxu_dtype,
                               approx_softmax=bool(approx_softmax))
    blk_a = 4 * (Bb * (N * D + N * M + M * D + M * Dout) + D * M + D * Dout + 128)
    # TODO(synk): at production D ~ 1024, single-buffer the constant-index weight specs
    # (pipeline_mode=pl.Buffered(1)) to reclaim their second VMEM buffer.
    R, Y, pstats = pl.pallas_call(
        kern_a,
        grid=(G,),
        out_shape=(
            jax.ShapeDtypeStruct((B, N, M), f32),       # R
            jax.ShapeDtypeStruct((B, M, Dout), f32),    # Y = X_pool @ Wg
            jax.ShapeDtypeStruct((G, 1, 128), f32),     # per-block BN moments of X_pool
        ),
        in_specs=[
            pl.BlockSpec(memory_space=pltpu.MemorySpace.SMEM),     # BN(x) stats (scalars)
            pl.BlockSpec((Bb, N, D), lambda g: (g, 0, 0)),         # x, Bb batch slices
            pl.BlockSpec((D, M), lambda g: (0, 0)),                # Wr, VMEM-resident
            pl.BlockSpec((D, Dout), lambda g: (0, 0)),             # Wg, VMEM-resident
        ],
        out_specs=(
            pl.BlockSpec((Bb, N, M), lambda g: (g, 0, 0)),
            pl.BlockSpec((Bb, M, Dout), lambda g: (g, 0, 0)),
            pl.BlockSpec((1, 1, 128), lambda g: (g, 0, 0)),
        ),
        compiler_params=pltpu.CompilerParams(
            dimension_semantics=("parallel",),
            vmem_limit_bytes=int(min(max(3 * blk_a + (4 << 20), 8 << 20), vmem_cap)),
        ),
    )(stats_x, x, w_r, w_g)

    # Global BN stats of X_pool from per-block centered moments (Chan combination —
    # two-pass-quality numerics without re-reading X_pool from HBM).
    pmean = pstats[:, 0, 0]
    pm2 = pstats[:, 0, 1]
    n_blk = Bb * M * D
    mu_p = jnp.mean(pmean)
    m2_tot = jnp.sum(pm2) + n_blk * jnp.sum(jnp.square(pmean - mu_p))
    var_p = m2_tot / (G * n_blk)
    inv_std_p = lax.rsqrt(var_p + BN_EPS)

    # Fold BN through the already-applied matmul: BN(Xp) @ Wg = inv_std*Y - mu*inv_std*colsum(Wg).
    colsum_wg = jnp.sum(w_g, axis=0)                                        # (Dout,)
    affine = jnp.stack([inv_std_p * jnp.ones((Dout,), f32),
                        (mu_p * inv_std_p) * colsum_wg]).astype(f32)        # (2, Dout)

    kern_b = functools.partial(_unpool_kernel, namda=float(namda), mxu_dtype=mxu_dtype)
    blk_b = 4 * (Bb * (N * D + N * M + M * Dout + N * Dout) + 2 * Dout)
    x_out = pl.pallas_call(
        kern_b,
        grid=(G,),
        out_shape=jax.ShapeDtypeStruct((B, N, Dout), f32),
        in_specs=[
            pl.BlockSpec((2, Dout), lambda g: (0, 0)),             # folded-BN affine
            pl.BlockSpec((Bb, N, D), lambda g: (g, 0, 0)),         # x (aliased to out)
            pl.BlockSpec((Bb, N, M), lambda g: (g, 0, 0)),         # R
            pl.BlockSpec((Bb, M, Dout), lambda g: (g, 0, 0)),      # Y
        ],
        out_specs=pl.BlockSpec((Bb, N, Dout), lambda g: (g, 0, 0)),
        input_output_aliases={1: 0},   # residual add reuses x's HBM buffer
        compiler_params=pltpu.CompilerParams(
            dimension_semantics=("parallel",),
            vmem_limit_bytes=int(min(max(3 * blk_b + (4 << 20), 8 << 20), vmem_cap)),
        ),
    )(affine, x, R, Y)
    return x_out, R


def _reference(x, L, w_r, w_g, namda):
    """Pure-JAX mirror of the PyTorch forward (k=1, head=1, training-mode BN)."""
    del L  # identity adjacency support for k=1

    def bn(t):
        mu = jnp.mean(t)
        var = jnp.mean((t - mu) ** 2)
        return (t - mu) / jnp.sqrt(var + BN_EPS)

    logits = _leaky_relu(bn(x) @ w_r)
    R = jax.nn.softmax(logits, axis=-1)
    Xp = jnp.einsum('bnm,bnd->bmd', R, x)
    Xg = _leaky_relu(bn(Xp) @ w_g)
    Xu = jnp.einsum('bnm,bme->bne', R, Xg)
    return Xu * namda + x, R


if __name__ == "__main__":
    # Pool_Generator(GNN_in=D, GNN_out_dim=D, N_next=M, head=1, k=1, namda=0.5)
    B, N, D, M = 8, 16, 32, 8
    key = jax.random.PRNGKey(0)
    k1, k2, k3, k4 = jax.random.split(key, 4)

    x = jax.random.normal(k1, (B, N, D), jnp.float32)
    L = jax.random.uniform(k2, (B, 1, N, N), jnp.float32)

    # Xavier-normal init (gain=1) for the two GraphConvolution weights.
    w_r = jax.random.normal(k3, (D, M), jnp.float32) * (2.0 / (D + M)) ** 0.5
    w_g = jax.random.normal(k4, (D, D), jnp.float32) * (2.0 / (D + D)) ** 0.5

    x_ref_out, R_ref = _reference(x, L, w_r, w_g, NAMDA)

    # f32 MXU operands + exact softmax reciprocal: tight parity with the PyTorch math.
    fn_f32 = jax.jit(functools.partial(pool_generator, mxu_dtype=jnp.float32,
                                       approx_softmax=False))
    x_out, R = fn_f32(x, L, w_r, w_g)
    jax.block_until_ready((x_out, R))
    assert x_out.shape == (B, N, D) and R.shape == (B, N, M)
    assert jnp.allclose(R, R_ref, atol=1e-5, rtol=1e-5)
    assert jnp.allclose(x_out, x_ref_out, atol=1e-4, rtol=1e-4)

    # Default fast path: bf16 MXU operands (f32 accumulation) + EUP reciprocal.
    fn_fast = jax.jit(pool_generator)
    x_fast, R_fast = fn_fast(x, L, w_r, w_g)
    jax.block_until_ready((x_fast, R_fast))
    assert bool(jnp.all(jnp.isfinite(x_fast))) and bool(jnp.all(jnp.isfinite(R_fast)))
    assert float(jnp.max(jnp.abs(R_fast - R_ref))) < 5e-2
    assert float(jnp.max(jnp.abs(x_fast - x_ref_out))) < 1.5e-1

    print("KERNEL_OK")
</pallas_src>

<mosaic_0001>
module attributes {stable_mosaic.version = 11 : i64} {
  func.func @_unpool_kernel(%arg0: i32, %arg1: memref<2x32xf32, #tpu.memory_space<vmem>>, %arg2: memref<4x16x32xf32, #tpu.memory_space<vmem>>, %arg3: memref<4x16x8xf32, #tpu.memory_space<vmem>>, %arg4: memref<4x8x32xf32, #tpu.memory_space<vmem>>, %arg5: memref<4x16x32xf32, #tpu.memory_space<vmem>>) attributes {dimension_semantics = [#tpu.dimension_semantics<parallel>], iteration_bounds = array<i64: 2>, scalar_prefetch = 0 : i64, scratch_operands = 0 : i64, tpu.core_type = #tpu.core_type<tc>, window_params = [{pipeline_mode = #tpu.pipeline_mode<synchronous>, transform_indices = @transform_0, window_bounds = array<i64: 2, 32>}, {transform_indices = @transform_1, window_bounds = array<i64: 4, 16, 32>}, {transform_indices = @transform_2, window_bounds = array<i64: 4, 16, 8>}, {transform_indices = @transform_3, window_bounds = array<i64: 4, 8, 32>}, {transform_indices = @transform_4, window_bounds = array<i64: 4, 16, 32>}]} {
    %c0 = arith.constant 0 : index
    %c0_0 = arith.constant 0 : index
    %c0_1 = arith.constant 0 : index
    %0 = vector.load %arg2[%c0, %c0_0, %c0_1] : memref<4x16x32xf32, #tpu.memory_space<vmem>>, vector<4x16x32xf32>
    %c0_2 = arith.constant 0 : index
    %c0_3 = arith.constant 0 : index
    %c0_4 = arith.constant 0 : index
    %1 = vector.load %arg3[%c0_2, %c0_3, %c0_4] : memref<4x16x8xf32, #tpu.memory_space<vmem>>, vector<4x16x8xf32>
    %c0_5 = arith.constant 0 : index
    %c0_6 = arith.constant 0 : index
    %c0_7 = arith.constant 0 : index
    %2 = vector.load %arg4[%c0_5, %c0_6, %c0_7] : memref<4x8x32xf32, #tpu.memory_space<vmem>>, vector<4x8x32xf32>
    %c0_8 = arith.constant 0 : index
    %c0_9 = arith.constant 0 : index
    %3 = vector.load %arg1[%c0_8, %c0_9] : memref<2x32xf32, #tpu.memory_space<vmem>>, vector<2x32xf32>
    %4 = vector.extract_strided_slice %3 {offsets = [0, 0], sizes = [1, 32], strides = [1, 1]} : vector<2x32xf32> to vector<1x32xf32>
    %5 = vector.shape_cast %4 : vector<1x32xf32> to vector<1x1x32xf32>
    %6 = vector.extract_strided_slice %3 {offsets = [1, 0], sizes = [1, 32], strides = [1, 1]} : vector<2x32xf32> to vector<1x32xf32>
    %7 = vector.shape_cast %6 : vector<1x32xf32> to vector<1x1x32xf32>
    %8 = vector.broadcast %5 : vector<1x1x32xf32> to vector<4x8x32xf32>
    %9 = arith.mulf %2, %8 : vector<4x8x32xf32>
    %10 = vector.broadcast %7 : vector<1x1x32xf32> to vector<4x8x32xf32>
    %11 = arith.subf %9, %10 : vector<4x8x32xf32>
    %cst = arith.constant 0.000000e+00 : f32
    %12 = vector.broadcast %cst : f32 to vector<4x8x32xf32>
    %13 = arith.cmpf oge, %11, %12 : vector<4x8x32xf32>
    %cst_10 = arith.constant 0.00999999977 : f32
    %14 = vector.broadcast %cst_10 : f32 to vector<4x8x32xf32>
    %15 = arith.mulf %14, %11 : vector<4x8x32xf32>
    %16 = arith.select %13, %11, %15 : vector<4x8x32xi1>, vector<4x8x32xf32>
    "tpu.trace_start"() <{level = 10 : i32, message = "bnm,bmd->bnd"}> : () -> ()
    %cst_11 = arith.constant dense<0.000000e+00> : vector<4x16x32xf32>
    %17 = tpu.matmul %1, %16, %cst_11 {dimension_numbers = #tpu.dot_dimension_numbers<[2], [1], [1], [2], [0, 0, 0, 1, 1, 2], [0], [0]>} : vector<4x16x8xf32>, vector<4x8x32xf32>, vector<4x16x32xf32> -> vector<4x16x32xf32>
    "tpu.trace_stop"() : () -> ()
    %cst_12 = arith.constant 5.000000e-01 : f32
    %18 = vector.broadcast %cst_12 : f32 to vector<4x16x32xf32>
    %19 = arith.mulf %17, %18 : vector<4x16x32xf32>
    %20 = arith.addf %19, %0 : vector<4x16x32xf32>
    %c0_13 = arith.constant 0 : index
    %c0_14 = arith.constant 0 : index
    %c0_15 = arith.constant 0 : index
    %21 = vector.load %arg5[%c0_13, %c0_14, %c0_15] : memref<4x16x32xf32, #tpu.memory_space<vmem>>, vector<4x16x32xf32>
    tpu.vector_store %arg5[%c0_13, %c0_14, %c0_15], %20 {strides = array<i32>} : memref<4x16x32xf32, #tpu.memory_space<vmem>>, vector<4x16x32xf32>,
    return
  }
  func.func @transform_0(%arg0: i32) -> (i32, i32) {
    %c0_i32 = arith.constant 0 : i32
    %c0_i32_0 = arith.constant 0 : i32
    %c0_i32_1 = arith.constant 0 : i32
    return %c0_i32, %c0_i32_0 : i32, i32
  }
  func.func @transform_1(%arg0: i32) -> (i32, i32, i32) {
    %c0_i32 = arith.constant 0 : i32
    %c0_i32_0 = arith.constant 0 : i32
    %c0_i32_1 = arith.constant 0 : i32
    return %arg0, %c0_i32, %c0_i32_0 : i32, i32, i32
  }
  func.func @transform_2(%arg0: i32) -> (i32, i32, i32) {
    %c0_i32 = arith.constant 0 : i32
    %c0_i32_0 = arith.constant 0 : i32
    %c0_i32_1 = arith.constant 0 : i32
    return %arg0, %c0_i32, %c0_i32_0 : i32, i32, i32
  }
  func.func @transform_3(%arg0: i32) -> (i32, i32, i32) {
    %c0_i32 = arith.constant 0 : i32
    %c0_i32_0 = arith.constant 0 : i32
    %c0_i32_1 = arith.constant 0 : i32
    return %arg0, %c0_i32, %c0_i32_0 : i32, i32, i32
  }
  func.func @transform_4(%arg0: i32) -> (i32, i32, i32) {
    %c0_i32 = arith.constant 0 : i32
    %c0_i32_0 = arith.constant 0 : i32
    %c0_i32_1 = arith.constant 0 : i32
    return %arg0, %c0_i32, %c0_i32_0 : i32, i32, i32
  }
}

module attributes {stable_mosaic.version = 11 : i64} {
  func.func @_r_pool_kernel(%arg0: i32, %arg1: memref<2xf32, #tpu.memory_space<smem>>, %arg2: memref<4x16x32xf32, #tpu.memory_space<vmem>>, %arg3: memref<32x8xf32, #tpu.memory_space<vmem>>, %arg4: memref<32x32xf32, #tpu.memory_space<vmem>>, %arg5: memref<4x16x8xf32, #tpu.memory_space<vmem>>, %arg6: memref<4x8x32xf32, #tpu.memory_space<vmem>>, %arg7: memref<1x1x128xf32, #tpu.memory_space<vmem>>) attributes {dimension_semantics = [#tpu.dimension_semantics<parallel>], iteration_bounds = array<i64: 2>, scalar_prefetch = 0 : i64, scratch_operands = 0 : i64, tpu.core_type = #tpu.core_type<tc>, window_params = [{transform_indices = @transform_0, window_bounds = array<i64: 2>}, {transform_indices = @transform_1, window_bounds = array<i64: 4, 16, 32>}, {pipeline_mode = #tpu.pipeline_mode<synchronous>, transform_indices = @transform_2, window_bounds = array<i64: 32, 8>}, {pipeline_mode = #tpu.pipeline_mode<synchronous>, transform_indices = @transform_3, window_bounds = array<i64: 32, 32>}, {transform_indices = @transform_4, window_bounds = array<i64: 4, 16, 8>}, {transform_indices = @transform_5, window_bounds = array<i64: 4, 8, 32>}, {transform_indices = @transform_6, window_bounds = array<i64: 1, 1, 128>}]} {
    %c0 = arith.constant 0 : index
    %0 = memref.load %arg1[%c0] : memref<2xf32, #tpu.memory_space<smem>>
    %c1 = arith.constant 1 : index
    %1 = memref.load %arg1[%c1] : memref<2xf32, #tpu.memory_space<smem>>
    %c0_0 = arith.constant 0 : index
    %c0_1 = arith.constant 0 : index
    %c0_2 = arith.constant 0 : index
    %2 = vector.load %arg2[%c0_0, %c0_1, %c0_2] : memref<4x16x32xf32, #tpu.memory_space<vmem>>, vector<4x16x32xf32>
    %3 = vector.broadcast %0 : f32 to vector<4x16x32xf32>
    %4 = arith.subf %2, %3 : vector<4x16x32xf32>
    %5 = vector.broadcast %1 : f32 to vector<4x16x32xf32>
    %6 = arith.mulf %4, %5 : vector<4x16x32xf32>
    %7 = vector.shape_cast %6 : vector<4x16x32xf32> to vector<64x32xf32>
    %c0_3 = arith.constant 0 : index
    %c0_4 = arith.constant 0 : index
    %8 = vector.load %arg3[%c0_3, %c0_4] : memref<32x8xf32, #tpu.memory_space<vmem>>, vector<32x8xf32>
    %cst = arith.constant dense<0.000000e+00> : vector<64x8xf32>
    %9 = tpu.matmul %7, %8, %cst {dimension_numbers = #tpu.dot_dimension_numbers<[1], [0], [0], [1], [0, 0, 1, 1], [], []>} : vector<64x32xf32>, vector<32x8xf32>, vector<64x8xf32> -> vector<64x8xf32>
    %cst_5 = arith.constant 0.000000e+00 : f32
    %10 = vector.broadcast %cst_5 : f32 to vector<64x8xf32>
    %11 = arith.cmpf oge, %9, %10 : vector<64x8xf32>
    %cst_6 = arith.constant 0.00999999977 : f32
    %12 = vector.broadcast %cst_6 : f32 to vector<64x8xf32>
    %13 = arith.mulf %12, %9 : vector<64x8xf32>
    %14 = arith.select %11, %9, %13 : vector<64x8xi1>, vector<64x8xf32>
    %cst_7 = arith.constant dense<0xFF800000> : vector<64xf32>
    %15 = vector.multi_reduction <maximumf>, %14, %cst_7 [1] : vector<64x8xf32> to vector<64xf32>
    %16 = vector.shape_cast %15 : vector<64xf32> to vector<64x1xf32>
    %17 = vector.broadcast %16 : vector<64x1xf32> to vector<64x8xf32>
    %18 = arith.subf %14, %17 : vector<64x8xf32>
    %19 = math.exp %18 : vector<64x8xf32>
    %cst_8 = arith.constant dense<0.000000e+00> : vector<64xf32>
    %20 = vector.multi_reduction <add>, %19, %cst_8 [1] : vector<64x8xf32> to vector<64xf32>
    %21 = vector.shape_cast %20 : vector<64xf32> to vector<64x1xf32>
    %22 = tpu.reciprocal %21 : vector<64x1xf32> -> vector<64x1xf32>
    %23 = vector.broadcast %22 : vector<64x1xf32> to vector<64x8xf32>
    %24 = arith.mulf %19, %23 : vector<64x8xf32>
    %25 = vector.shape_cast %24 : vector<64x8xf32> to vector<4x16x8xf32>
    %c0_9 = arith.constant 0 : index
    %c0_10 = arith.constant 0 : index
    %c0_11 = arith.constant 0 : index
    %26 = vector.load %arg5[%c0_9, %c0_10, %c0_11] : memref<4x16x8xf32, #tpu.memory_space<vmem>>, vector<4x16x8xf32>
    tpu.vector_store %arg5[%c0_9, %c0_10, %c0_11], %25 {strides = array<i32>} : memref<4x16x8xf32, #tpu.memory_space<vmem>>, vector<4x16x8xf32>,
    "tpu.trace_start"() <{level = 10 : i32, message = "bnm,bnd->bmd"}> : () -> ()
    %cst_12 = arith.constant dense<0.000000e+00> : vector<4x8x32xf32>
    %27 = tpu.matmul %25, %2, %cst_12 {dimension_numbers = #tpu.dot_dimension_numbers<[1], [1], [2], [2], [0, 0, 0, 2, 1, 2], [0], [0]>} : vector<4x16x8xf32>, vector<4x16x32xf32>, vector<4x8x32xf32> -> vector<4x8x32xf32>
    "tpu.trace_stop"() : () -> ()
    %28 = vector.shape_cast %27 : vector<4x8x32xf32> to vector<32x32xf32>
    %c0_13 = arith.constant 0 : index
    %c0_14 = arith.constant 0 : index
    %29 = vector.load %arg4[%c0_13, %c0_14] : memref<32x32xf32, #tpu.memory_space<vmem>>, vector<32x32xf32>
    %cst_15 = arith.constant dense<0.000000e+00> : vector<32x32xf32>
    %30 = tpu.matmul %28, %29, %cst_15 {dimension_numbers = #tpu.dot_dimension_numbers<[1], [0], [0], [1], [0, 0, 1, 1], [], []>} : vector<32x32xf32>, vector<32x32xf32>, vector<32x32xf32> -> vector<32x32xf32>
    %31 = vector.shape_cast %30 : vector<32x32xf32> to vector<4x8x32xf32>
    %c0_16 = arith.constant 0 : index
    %c0_17 = arith.constant 0 : index
    %c0_18 = arith.constant 0 : index
    %32 = vector.load %arg6[%c0_16, %c0_17, %c0_18] : memref<4x8x32xf32, #tpu.memory_space<vmem>>, vector<4x8x32xf32>
    tpu.vector_store %arg6[%c0_16, %c0_17, %c0_18], %31 {strides = array<i32>} : memref<4x8x32xf32, #tpu.memory_space<vmem>>, vector<4x8x32xf32>,
    %33 = vector.shape_cast %27 : vector<4x8x32xf32> to vector<1x4x8x32xf32>
    %cst_19 = arith.constant dense<0.000000e+00> : vector<1xf32>
    %34 = vector.multi_reduction <add>, %33, %cst_19 [1, 2, 3] : vector<1x4x8x32xf32> to vector<1xf32>
    %35 = vector.shape_cast %34 : vector<1xf32> to vector<1x1x1x1xf32>
    %36 = vector.extract %35[0, 0, 0, 0] : f32 from vector<1x1x1x1xf32>
    %cst_20 = arith.constant 9.765625E-4 : f32
    %37 = arith.mulf %36, %cst_20 : f32
    %38 = vector.broadcast %37 : f32 to vector<4x8x32xf32>
    %39 = arith.subf %27, %38 : vector<4x8x32xf32>
    %40 = arith.mulf %39, %39 : vector<4x8x32xf32>
    %41 = vector.shape_cast %40 : vector<4x8x32xf32> to vector<1x4x8x32xf32>
    %cst_21 = arith.constant dense<0.000000e+00> : vector<1xf32>
    %42 = vector.multi_reduction <add>, %41, %cst_21 [1, 2, 3] : vector<1x4x8x32xf32> to vector<1xf32>
    %43 = vector.shape_cast %42 : vector<1xf32> to vector<1x1x1x1xf32>
    %44 = vector.extract %43[0, 0, 0, 0] : f32 from vector<1x1x1x1xf32>
    %45 = tpu.iota {dimensions = array<i32: 2>} : vector<1x1x128xi32>
    %c0_i32 = arith.constant 0 : i32
    %46 = vector.broadcast %c0_i32 : i32 to vector<1x1x128xi32>
    %47 = arith.cmpi eq, %45, %46 : vector<1x1x128xi32>
    %c1_i32 = arith.constant 1 : i32
    %48 = vector.broadcast %c1_i32 : i32 to vector<1x1x128xi32>
    %49 = arith.cmpi eq, %45, %48 : vector<1x1x128xi32>
    %cst_22 = arith.constant 0.000000e+00 : f32
    %50 = vector.broadcast %44 : f32 to vector<1x1x128xf32>
    %51 = vector.broadcast %cst_22 : f32 to vector<1x1x128xf32>
    %52 = arith.select %49, %50, %51 : vector<1x1x128xi1>, vector<1x1x128xf32>
    %53 = vector.broadcast %37 : f32 to vector<1x1x128xf32>
    %54 = arith.select %47, %53, %52 : vector<1x1x128xi1>, vector<1x1x128xf32>
    %c0_23 = arith.constant 0 : index
    %c0_24 = arith.constant 0 : index
    %c0_25 = arith.constant 0 : index
    %55 = vector.load %arg7[%c0_23, %c0_24, %c0_25] : memref<1x1x128xf32, #tpu.memory_space<vmem>>, vector<1x1x128xf32>
    tpu.vector_store %arg7[%c0_23, %c0_24, %c0_25], %54 {strides = array<i32>} : memref<1x1x128xf32, #tpu.memory_space<vmem>>, vector<1x1x128xf32>,
    return
  }
  func.func @transform_0(%arg0: i32) -> i32 {
    %c0_i32 = arith.constant 0 : i32
    %c0_i32_0 = arith.constant 0 : i32
    return %c0_i32 : i32
  }
  func.func @transform_1(%arg0: i32) -> (i32, i32, i32) {
    %c0_i32 = arith.constant 0 : i32
    %c0_i32_0 = arith.constant 0 : i32
    %c0_i32_1 = arith.constant 0 : i32
    return %arg0, %c0_i32, %c0_i32_0 : i32, i32, i32
  }
  func.func @transform_2(%arg0: i32) -> (i32, i32) {
    %c0_i32 = arith.constant 0 : i32
    %c0_i32_0 = arith.constant 0 : i32
    %c0_i32_1 = arith.constant 0 : i32
    return %c0_i32, %c0_i32_0 : i32, i32
  }
  func.func @transform_3(%arg0: i32) -> (i32, i32) {
    %c0_i32 = arith.constant 0 : i32
    %c0_i32_0 = arith.constant 0 : i32
    %c0_i32_1 = arith.constant 0 : i32
    return %c0_i32, %c0_i32_0 : i32, i32
  }
  func.func @transform_4(%arg0: i32) -> (i32, i32, i32) {
    %c0_i32 = arith.constant 0 : i32
    %c0_i32_0 = arith.constant 0 : i32
    %c0_i32_1 = arith.constant 0 : i32
    return %arg0, %c0_i32, %c0_i32_0 : i32, i32, i32
  }
  func.func @transform_5(%arg0: i32) -> (i32, i32, i32) {
    %c0_i32 = arith.constant 0 : i32
    %c0_i32_0 = arith.constant 0 : i32
    %c0_i32_1 = arith.constant 0 : i32
    return %arg0, %c0_i32, %c0_i32_0 : i32, i32, i32
  }
  func.func @transform_6(%arg0: i32) -> (i32, i32, i32) {
    %c0_i32 = arith.constant 0 : i32
    %c0_i32_0 = arith.constant 0 : i32
    %c0_i32_1 = arith.constant 0 : i32
    return %arg0, %c0_i32, %c0_i32_0 : i32, i32, i32
  }
}

</mosaic_0001>

<bundles_post_ra>
// kernel: pool_generator.2
= control target key start
LH: loop header
LB: loop body
LE: loop exit
PB: predicated region body
PF: predicated region fallthrough
CT: control target
= control target key end

     0   :  { %12 = vsyncpa [#allocation3], 0  ;;  %s1544_s21 = smov 0   ;;  %s1732_s0 = inlined_call_operand.vmem [shape: f32[2], index: 0, kind: input, shape index: {}]   ;;  %s1733_s1 = inlined_call_operand.vmem [shape: f32[8,16,32], index: 1, kind: input, shape index: {}]   ;;  %s1734_s2 = inlined_call_operand.vmem [shape: f32[32,8], index: 2, kind: input, shape index: {}]   ;;  %s1735_s3 = inlined_call_operand.vmem [shape: f32[32,32], index: 3, kind: input, shape index: {}]   ;;  %s1736_s4 = inlined_call_operand.vmem [shape: f32[8,16,8], index: 4, kind: output, shape index: {0}]   ;;  %s1737_s5 = inlined_call_operand.vmem [shape: f32[8,8,32], index: 5, kind: output, shape index: {1}]   ;;  %s1738_s6 = inlined_call_operand.vmem [shape: f32[2,1,128], index: 6, kind: output, shape index: {2}]  }
   0x1 LB: > { %s1550_s22 = sadd.s32 4294967295, %s1504_s21   ;;  %p1286_p0 = scmp.ge.s32.totalorder %s1504_s21, 1  ;;  %s1504_s21 = sphi %s1544_s21, %s18_s21  }
   0x2   : > { %p190_p1 = scmp.lt.s32.totalorder %s1504_s21, 3  ;;  %s203_s25 = sshll.u32 %s1732_s0, 4  ;;  %s204_s25 = int_to_ptr.vmem [resolvable:$true] %s203_s25 }
   0x3   : > { %p1434_p3 = scmp.eq.s32.totalorder %s1550_s22, 0  ;;  %s1479_s27 = scalar_lea.vmem %s204_s25, 16 }
   0x4   : > { %p1557_p2 = pnand %p1286_p0, %p190_p1  ;;  %p1480_p6 = scmp.ne.s32.totalorder %s204_s25, %s1479_s27 }
   0x5   : > { %p1487_p10 = scmp.lt.s32.totalorder %s204_s25, %s204_s25  ;;  %p1488_p11 = scmp.lt.s32.totalorder %s1479_s27, %s1479_s27 }
   0x6   : > { %p1430_p4 = pneg %p1557_p2 }
   0x7   : > { %p1489_p12 = por %p1488_p11, %p1487_p10 }
   0x8   : > { %p1431_p5 = pnand %p1434_p3, %p1430_p4 }
   0xa   : > { %p1481_p7 = pneg %p1431_p5 }
   0xc   : > { %p1482_p8 = pnand %p1481_p7, %p1480_p6 }
   0xe   : > { %p1483_p9 = pneg %p1482_p8 }
  0x10   : > { %p1490_p13 = pnand %p1489_p12, %p1483_p9 }
  0x12   : > { %1493 = shalt.err (!%p1490_p13)
}
  0x13   : > { %s1506_s28 = smov [#allocation2]   ;;  %232 = sbr.rel (%p1557_p2) target bundleno = 1301 (0x515), region = 36 }
  0x14   : > { %1433 = dma.vmem_to_smem (!%p1431_p5), %s204_s25, 16, %s1506_s28, [#allocation3]  }
  0x18   : > { %1499 = dma.done.wait (%p1434_p3), [#allocation3], 16  }
  0x19   : > { %1501 = vsyncadd (%p1434_p3), [#allocation3], 4294967280 }
  0x1a   : > { %238 = sfence }
  0x1b   : > { %v327_v0 = vld [vmem:[%s1734_s2 + $0x18] sm:$0xff]  ;;  %v326_v1 = vld [vmem:[%s1734_s2 + $0x10] sm:$0xff]  ;;  %s1291_s9 = sshll.u32 %s1550_s22, 2  ;;  %s296_s10 = sld [smem:[#allocation2]]  ;;  %v325_v2 = vld [vmem:[%s1734_s2 + $0x8] sm:$0xff]  ;;  %vm328_vm0 = vcmask 261120  }
  0x1c   : > { %1352 = vmatprep.subr.mxu0 %v327_v0  ;;  %p274_p0 = scmp.lt.s32.totalorder %s1291_s9, 7  ;;  %s1299_s11 = sld [smem:[#allocation2 + $0x1]]  ;;  %1414 = vmatprep.subr.mxu1 %v327_v0  ;;  %v324_v3 = vld [vmem:[%s1734_s2] sm:$0xff]  ;;  %vm482_vm3 = vcmask 64512   ;;  %vm1508_vm10 = vmmov 0   ;;  %vm611_vm11 = vcmask 130048  }
  0x1d   : > { %1353 = vmatpush3.msra.mxu0 %v327_v0  ;;  %1418 = vmatpush3.msra.mxu1 %v327_v0  ;;  %p293_p1 = scmp.lt.s32.totalorder %s1550_s22, 1 }
  0x1e   : > { %1354 = vmatprep.subr.mxu0 %v326_v1  ;;  %s1741_s9 = smov (!%p274_p0, %s1291_s9), 7  ;;  %1415 = vmatprep.subr.mxu1 %v326_v1 }
  0x1f   : > { %1355 = vmatpush3.msra.mxu0 %v326_v1  ;;  %1419 = vmatpush3.msra.mxu1 %v326_v1  ;;  %s1318_s16 = sshll.u32 %s1741_s9, 4  ;;  %s1743_s22 = smov (!%p293_p1, %s1550_s22), 1 }
  0x20   : > { %1356 = vmatprep.subr.mxu0 %v325_v2  ;;  %1416 = vmatprep.subr.mxu1 %v325_v2  ;;  %s278_s19 = scalar_lea.vmem %s1733_s1, %s1318_s16  ;;  %s1653_s24 = scalar_lea.vmem %s1736_s4, %s1318_s16 }
  0x21   : > { %1357 = vmatpush3.msra.mxu0 %v325_v2  ;;  %v306_v4 = vstv %s296_s10  ;;  %1420 = vmatpush3.msra.mxu1 %v325_v2  ;;  %v1593_v5 = vld [vmem:[%s278_s19] sm:$0xff]  ;;  %v1595_v7 = vld [vmem:[%s278_s19 + $0x8] sm:$0xff]  ;;  %v1597_v8 = vld [vmem:[%s278_s19 + $0x10] sm:$0xff]  ;;  %s1298_s10 = sshll.u32 %s1741_s9, 3  ;;  %s295_s18 = scalar_lea.vmem %s1738_s6, %s1743_s22 }
  0x22   : > { %1358 = vmatprep.subr.mxu0 %v324_v3  ;;  %v315_v6 = vstv %s1299_s11  ;;  %1417 = vmatprep.subr.mxu1 %v324_v3  ;;  %v307_v9 = vsub.f32 %v1593_v5, %v306_v4  ;;  %v308_v10 = vsub.f32 %v1595_v7, %v306_v4  ;;  %v309_v11 = vsub.f32 %v1597_v8, %v306_v4  ;;  %v1602_v12 = vld [vmem:[%s278_s19 + $0x18] sm:$0xff]  ;;  %v1604_v13 = vld [vmem:[%s278_s19 + $0x20] sm:$0xff]  ;;  %v1606_v14 = vld [vmem:[%s278_s19 + $0x30] sm:$0xff]  ;;  %s291_s13 = scalar_lea.vmem %s1737_s5, %s1298_s10 }
  0x23   : > { %1359 = vmatpush3.msra.mxu0 %v324_v3  ;;  %1421 = vmatpush3.msra.mxu1 %v324_v3  ;;  %v310_v15 = vsub.f32 %v1602_v12, %v306_v4  ;;  %v313_v16 = vsub.f32 %v1606_v14, %v306_v4  ;;  %v1610_v17 = vld [vmem:[%s278_s19 + $0x38] sm:$0xff]  ;;  %v311_v21 = vsub.f32 %v1604_v13, %v306_v4  ;;  %v1613_v22 = vld [vmem:[%s278_s19 + $0x28] sm:$0xff] }
  0x24   : > { %v316_v18 = vmul.f32 %v315_v6, %v307_v9  ;;  %v317_v19 = vmul.f32 %v315_v6, %v308_v10  ;;  %v318_v20 = vmul.f32 %v315_v6, %v309_v11  ;;  %v314_v24 = vsub.f32 %v1610_v17, %v306_v4 }
  0x25   : > { %v322_v23 = vmul.f32 %v315_v6, %v313_v16  ;;  %v319_v25 = vmul.f32 %v315_v6, %v310_v15  ;;  %v312_v26 = vsub.f32 %v1613_v22, %v306_v4  ;;  %v320_v28 = vmul.f32 %v315_v6, %v311_v21 }
  0x26   : > { %1360 = vmatprep.mubr.msk.f32.mxu0 %vm328_vm0, %v316_v18  ;;  %v323_v27 = vmul.f32 %v315_v6, %v314_v24 }
  0x27   : > { %1361 = vmatmul.mubr.msk.f32.vlgmr.msra.gmra.mxu0 %vm328_vm0, %v317_v19  ;;  %1369 = vmatprep.mubr.msk.f32.mxu1 %vm328_vm0, %v322_v23  ;;  %v321_v29 = vmul.f32 %v315_v6, %v312_v26 }
  0x28   : > { %1363 = vmatprep.mubr.msk.f32.mxu0 %vm328_vm0, %v318_v20  ;;  %1370 = vmatmul.mubr.msk.f32.vlgmr.msra.gmra.mxu1 %vm328_vm0, %v323_v27 }
  0x2b   : > { %1364 = vmatmul.mubr.msk.f32.gmra.mxu0 %vm328_vm0, %v319_v25 }
  0x2c   : > { %1366 = vmatprep.mubr.msk.f32.mxu0 %vm328_vm0, %v320_v28 }
  0x2f   : > { %1367 = vmatmul.mubr.msk.f32.gmra.mxu0 %vm328_vm0, %v321_v29 }
  0xe7   : > { %v1362_v30 = vpop.f32.mrf.mxu0 }
  0xe8   : > { %v467_v32 = vmul.f32 0.01, %v1362_v30  ;;  %v1371_v34 = vpop.f32.mrf.mxu1  ;;  %vm459_vm2 = vcmp.ge.f32.partialorder %v1362_v30, 0.0 }
  0xe9   : > { %v419_v31 = vpop.f32.mrf.mxu0  ;;  %v473_v55 = vmul.f32 0.01, %v1371_v34  ;;  %vm465_vm9 = vcmp.ge.f32.partialorder %v1371_v34, 0.0 }
  0xea   : > { %v466_v33 = vmul.f32 0.01, %v419_v31  ;;  %vm458_vm1 = vcmp.ge.f32.partialorder %v419_v31, 0.0  ;;  %v449_v41 = vpop.f32.mrf.mxu1  ;;  %v475_v42 = vsel %vm459_vm2, %v1362_v30, %v467_v32 }
  0xeb   : > { %v1365_v35 = vpop.f32.mrf.mxu0  ;;  %v472_v46 = vmul.f32 0.01, %v449_v41  ;;  %v486_v47 = vsel %vm482_vm3, %v475_v42, -inf  ;;  %vm464_vm8 = vcmp.ge.f32.partialorder %v449_v41, 0.0  ;;  %v481_v60 = vsel %vm465_vm9, %v1371_v34, %v473_v55 }
  0xec   : > { %v474_v36 = vsel %vm458_vm1, %v419_v31, %v466_v33  ;;  %v469_v39 = vmul.f32 0.01, %v1365_v35  ;;  %vm461_vm5 = vcmp.ge.f32.partialorder %v1365_v35, 0.0  ;;  %v504_v61 = vsel %vm482_vm3, %v481_v60, -inf }
  0xed   : > { %v429_v37 = vpop.f32.mrf.mxu0  ;;  %v483_v38 = vsel %vm482_vm3, %v474_v36, -inf  ;;  %v480_v57 = vsel %vm464_vm8, %v449_v41, %v472_v46  ;;  %v1507_v46 = vmov 0.0  }
  0xee   : > { %v468_v40 = vmul.f32 0.01, %v429_v37  ;;  %484 = vmax.xlane.f32.xlu0 %v483_v38  ;;  %vm460_vm4 = vcmp.ge.f32.partialorder %v429_v37, 0.0  ;;  %v477_v51 = vsel %vm461_vm5, %v1365_v35, %v469_v39  ;;  %v501_v59 = vsel %vm482_vm3, %v480_v57, -inf  ;;  %1372 = vmatprep.subr.mxu1 %v1507_v46 }
  0xef   : > { %v1368_v43 = vpop.f32.mrf.mxu0  ;;  %v492_v53 = vsel %vm482_vm3, %v477_v51, -inf  ;;  %1376 = vmatprep.mubr.msk.f32.mxu1 %vm1508_vm10, %v1507_v46  ;;  %1373 = vmatpush3.msra.mxu1 %v1595_v7 }
  0xf0   : > { %v476_v44 = vsel %vm460_vm4, %v429_v37, %v468_v40  ;;  %v471_v49 = vmul.f32 0.01, %v1368_v43  ;;  %vm463_vm7 = vcmp.ge.f32.partialorder %v1368_v43, 0.0  ;;  %1374 = vmatprep.subr.mxu1 %v1507_v46 }
  0xf1   : > { %v439_v45 = vpop.f32.mrf.mxu0  ;;  %v489_v48 = vsel %vm482_vm3, %v476_v44, -inf  ;;  %1375 = vmatpush3.msra.mxu1 %v1593_v5 }
  0xf2   : > { %vm462_vm6 = vcmp.ge.f32.partialorder %v439_v45, 0.0  ;;  %v470_v50 = vmul.f32 0.01, %v439_v45  ;;  %487 = vmax.xlane.f32.xlu0 %v486_v47  ;;  %490 = vmax.xlane.f32.xlu1 %v489_v48  ;;  %v479_v56 = vsel %vm463_vm7, %v1368_v43, %v471_v49 }
  0xf3   : > { %v498_v58 = vsel %vm482_vm3, %v479_v56, -inf  ;;  %1379 = vmatprep.subr.mxu1 %v1507_v46 }
  0xf4   : > { %v478_v52 = vsel %vm462_vm6, %v439_v45, %v470_v50 }
  0xf5   : > { %v495_v54 = vsel %vm482_vm3, %v478_v52, -inf }
  0xf6   : > { %493 = vmax.xlane.f32.xlu1 %v492_v53  ;;  %496 = vmax.xlane.f32.xlu0 %v495_v54 }
  0xfa   : > { %499 = vmax.xlane.f32.xlu1 %v498_v58  ;;  %502 = vmax.xlane.f32.xlu0 %v501_v59 }
  0xfe   : > { %505 = vmax.xlane.f32.xlu1 %v504_v61 }
 0x177   : > { %v485_v62 = vpop.xlane.xlu0 %484 }
 0x178   : > { %v507_v63 = vsub.f32 %v474_v36, %v485_v62 }
 0x17a   : > { %v515_v0 = vmul.f32 1.442695, %v507_v63 }
 0x17b   : > { %v488_v1 = vpop.xlane.xlu0 %487  ;;  %v491_v2 = vpop.xlane.xlu1 %490 }
 0x17c   : > { %1447 = vpow2.f32 %v515_v0  ;;  %v508_v3 = vsub.f32 %v475_v42, %v488_v1  ;;  %v509_v4 = vsub.f32 %v476_v44, %v491_v2  ;;  %v1003_v2 = vld [vmem:[%s1735_s3 + $0x18] sm:$0xff] }
 0x17d   : > { %1400 = vmatprep.subr.mxu0 %v1003_v2 }
 0x17e   : > { %v517_v6 = vmul.f32 1.442695, %v508_v3  ;;  %v519_v9 = vmul.f32 1.442695, %v509_v4  ;;  %v1002_v4 = vld [vmem:[%s1735_s3 + $0x10] sm:$0xff]  ;;  %1401 = vmatpush3.msra.mxu0 %v1003_v2 }
 0x17f   : > { %v494_v10 = vpop.xlane.xlu1 %493  ;;  %v497_v11 = vpop.xlane.xlu0 %496  ;;  %1402 = vmatprep.subr.mxu0 %v1002_v4 }
 0x180   : > { %1449 = vpow2.f32 %v517_v6  ;;  %v510_v15 = vsub.f32 %v477_v51, %v494_v10  ;;  %v511_v16 = vsub.f32 %v478_v52, %v497_v11  ;;  %1403 = vmatpush3.msra.mxu0 %v1002_v4 }
 0x181   : > { %1451 = vpow2.f32 %v519_v9 }
 0x182   : > { %v521_v18 = vmul.f32 1.442695, %v510_v15  ;;  %v523_v19 = vmul.f32 1.442695, %v511_v16 }
 0x183   : > { %v500_v20 = vpop.xlane.xlu1 %499  ;;  %v503_v21 = vpop.xlane.xlu0 %502 }
 0x184   : > { %1453 = vpow2.f32 %v521_v18  ;;  %v512_v23 = vsub.f32 %v479_v56, %v500_v20  ;;  %v513_v24 = vsub.f32 %v480_v57, %v503_v21 }
 0x185   : > { %1455 = vpow2.f32 %v523_v19 }
 0x186   : > { %v525_v25 = vmul.f32 1.442695, %v512_v23  ;;  %v527_v26 = vmul.f32 1.442695, %v513_v24 }
 0x187   : > { %v506_v27 = vpop.xlane.xlu1 %505 }
 0x188   : > { %1457 = vpow2.f32 %v525_v25  ;;  %v514_v28 = vsub.f32 %v481_v60, %v506_v27 }
 0x189   : > { %v1448_v29 = vpop.eup %1447  ;;  %1459 = vpow2.f32 %v527_v26 }
 0x18a   : > { %v529_v30 = vmul.f32 1.442695, %v514_v28  ;;  %v531_v31 = vsel %vm482_vm3, %v1448_v29, 0.0 }
 0x18b   : > { %532 = vadd.xlane.f32.xlu0 %v531_v31 }
 0x18c   : > { %1461 = vpow2.f32 %v529_v30 }
 0x18d   : > { %v1450_v32 = vpop.eup %1449 }
 0x18e   : > { %v1452_v33 = vpop.eup %1451  ;;  %v534_v34 = vsel %vm482_vm3, %v1450_v32, 0.0 }
 0x18f   : > { %535 = vadd.xlane.f32.xlu1 %v534_v34  ;;  %v537_v35 = vsel %vm482_vm3, %v1452_v33, 0.0 }
 0x190   : > { %538 = vadd.xlane.f32.xlu0 %v537_v35 }
 0x191   : > { %v1454_v36 = vpop.eup %1453 }
 0x192   : > { %v1456_v37 = vpop.eup %1455  ;;  %v540_v38 = vsel %vm482_vm3, %v1454_v36, 0.0 }
 0x193   : > { %541 = vadd.xlane.f32.xlu1 %v540_v38  ;;  %v543_v39 = vsel %vm482_vm3, %v1456_v37, 0.0 }
 0x194   : > { %544 = vadd.xlane.f32.xlu0 %v543_v39 }
 0x195   : > { %v1458_v40 = vpop.eup %1457 }
 0x196   : > { %v1460_v41 = vpop.eup %1459  ;;  %v546_v42 = vsel %vm482_vm3, %v1458_v40, 0.0 }
 0x197   : > { %547 = vadd.xlane.f32.xlu1 %v546_v42  ;;  %v549_v43 = vsel %vm482_vm3, %v1460_v41, 0.0 }
 0x198   : > { %550 = vadd.xlane.f32.xlu0 %v549_v43 }
 0x199   : > { %v1462_v44 = vpop.eup %1461 }
 0x19a   : > { %v552_v45 = vsel %vm482_vm3, %v1462_v44, 0.0 }
 0x19b   : > { %553 = vadd.xlane.f32.xlu1 %v552_v45 }
 0x214   : > { %v533_v47 = vpop.xlane.xlu0 %532 }
 0x215   : > { %1463 = vrcp.f32 %v533_v47 }
 0x218   : > { %v536_v48 = vpop.xlane.xlu1 %535 }
 0x219   : > { %1465 = vrcp.f32 %v536_v48  ;;  %v539_v49 = vpop.xlane.xlu0 %538 }
 0x21a   : > { %1467 = vrcp.f32 %v539_v49 }
 0x21c   : > { %v542_v50 = vpop.xlane.xlu1 %541 }
 0x21d   : > { %1469 = vrcp.f32 %v542_v50  ;;  %v545_v51 = vpop.xlane.xlu0 %544 }
 0x21e   : > { %1471 = vrcp.f32 %v545_v51 }
 0x220   : > { %v548_v52 = vpop.xlane.xlu1 %547 }
 0x221   : > { %1473 = vrcp.f32 %v548_v52  ;;  %v551_v7 = vpop.xlane.xlu0 %550 }
 0x222   : > { %v1464_v53 = vpop.eup %1463  ;;  %1475 = vrcp.f32 %v551_v7 }
 0x223   : > { %v563_v5 = vmul.f32 %v1464_v53, %v1448_v29 }
 0x224   : > { %v554_v54 = vpop.xlane.xlu1 %553 }
 0x225   : > { %1477 = vrcp.f32 %v554_v54  ;;  %579 = vxpose.xlu0.b32.start [1/2] (short) (narrow) %v563_v5, 8  ;;  %571 = vst.msk [vmem:[%s1653_s24] sm:$0xff] %vm482_vm3, %v563_v5 }
 0x226   : > { %v1466_v55 = vpop.eup %1465 }
 0x227   : > { %v1468_v56 = vpop.eup %1467  ;;  %v564_v57 = vmul.f32 %v1466_v55, %v1450_v32 }
 0x228   : > { %v565_v58 = vmul.f32 %v1468_v56, %v1452_v33 }
 0x229   : > { %572 = vst.msk [vmem:[%s1653_s24 + $0x8] sm:$0xff] %vm482_vm3, %v564_v57  ;;  %580 = vxpose.xlu0.b32.end [2/2] (short) (narrow) %v564_v57, 8 }
 0x22a   : > { %v1470_v59 = vpop.eup %1469  ;;  %685 = vxpose.xlu1.b32.start [1/2] (short) (narrow) %v565_v58, 8  ;;  %573 = vst.msk [vmem:[%s1653_s24 + $0x10] sm:$0xff] %vm482_vm3, %v565_v58 }
 0x22b   : > { %v1472_v60 = vpop.eup %1471  ;;  %v566_v61 = vmul.f32 %v1470_v59, %v1454_v36 }
 0x22c   : > { %v567_v62 = vmul.f32 %v1472_v60, %v1456_v37 }
 0x22d   : > { %574 = vst.msk [vmem:[%s1653_s24 + $0x18] sm:$0xff] %vm482_vm3, %v566_v61 }
 0x22e   : > { %v1474_v63 = vpop.eup %1473  ;;  %686 = vxpose.xlu1.b32.end [2/2] (short) (narrow) %v566_v61, 8  ;;  %790 = vxpose.xlu0.b32.start [1/2] (short) (narrow) %v567_v62, 8  ;;  %575 = vst.msk [vmem:[%s1653_s24 + $0x20] sm:$0xff] %vm482_vm3, %v567_v62  ;;  %v1147_v62 = vlaneseq }
 0x22f   : > { %v1476_v0 = vpop.eup %1475  ;;  %v568_v1 = vmul.f32 %v1474_v63, %v1458_v40 }
 0x230   : > { %v569_v3 = vmul.f32 %v1476_v0, %v1460_v41  ;;  %v1148_v63 = vand.u32 127, %v1147_v62 }
 0x231   : > { %576 = vst.msk [vmem:[%s1653_s24 + $0x28] sm:$0xff] %vm482_vm3, %v568_v1 }
 0x232   : > { %v1478_v6 = vpop.eup %1477  ;;  %791 = vxpose.xlu0.b32.end [2/2] (short) (narrow) %v568_v1, 8  ;;  %895 = vxpose.xlu1.b32.start [1/2] (short) (narrow) %v569_v3, 8  ;;  %577 = vst.msk [vmem:[%s1653_s24 + $0x30] sm:$0xff] %vm482_vm3, %v569_v3  ;;  %vm1150_vm12 = vcmp.eq.s32.totalorder %v1148_v63, 1  ;;  %vm1149_vm13 = vcmp.eq.s32.totalorder %v1148_v63, 0 }
 0x233   : > { %v570_v9 = vmul.f32 %v1478_v6, %v1462_v44 }
 0x235   : > { %578 = vst.msk [vmem:[%s1653_s24 + $0x38] sm:$0xff] %vm482_vm3, %v570_v9 }
 0x236   : > { %896 = vxpose.xlu1.b32.end [2/2] (short) (narrow) %v570_v9, 8 }
 0x2a1   : > { %v595_v10 = vpop.trf.xlu0 }
 0x2a2   : > { %1377 = vmatmul.mubr.msk.f32.vlgmr.msra.gmra.mxu1 %vm611_vm11, %v595_v10 }
 0x2a3   : > { %1380 = vmatpush3.msra.mxu1 %v1602_v12  ;;  %1383 = vmatprep.mubr.msk.f32.mxu1 %vm1508_vm10, %v1507_v46 }
 0x2a4   : > { %1381 = vmatprep.subr.mxu1 %v1507_v46 }
 0x2a5   : > { %1382 = vmatpush3.msra.mxu1 %v1597_v8 }
 0x2a6   : > { %v701_v11 = vpop.trf.xlu1  ;;  %1386 = vmatprep.subr.mxu1 %v1507_v46 }
 0x2a7   : > { %1384 = vmatmul.mubr.msk.f32.vlgmr.msra.gmra.mxu1 %vm611_vm11, %v701_v11 }
 0x2a8   : > { %1387 = vmatpush3.msra.mxu1 %v1613_v22  ;;  %1390 = vmatprep.mubr.msk.f32.mxu1 %vm1508_vm10, %v1507_v46  ;;  %v1000_v22 = vld [vmem:[%s1735_s3] sm:$0xff] }
 0x2a9   : > { %1388 = vmatprep.subr.mxu1 %v1507_v46 }
 0x2aa   : > { %1389 = vmatpush3.msra.mxu1 %v1604_v13  ;;  %v806_v12 = vpop.trf.xlu0  ;;  %v1001_v13 = vld [vmem:[%s1735_s3 + $0x8] sm:$0xff] }
 0x2ab   : > { %1393 = vmatprep.subr.mxu1 %v1507_v46  ;;  %1391 = vmatmul.mubr.msk.f32.vlgmr.msra.gmra.mxu1 %vm611_vm11, %v806_v12 }
 0x2ac   : > { %1394 = vmatpush3.msra.mxu1 %v1610_v17  ;;  %1397 = vmatprep.mubr.msk.f32.mxu1 %vm1508_vm10, %v1507_v46 }
 0x2ad   : > { %1395 = vmatprep.subr.mxu1 %v1507_v46  ;;  %1404 = vmatprep.subr.mxu0 %v1001_v13 }
 0x2ae   : > { %1396 = vmatpush3.msra.mxu1 %v1606_v14  ;;  %v911_v8 = vpop.trf.xlu1  ;;  %1405 = vmatpush3.msra.mxu0 %v1001_v13 }
 0x2af   : > { %1398 = vmatmul.mubr.msk.f32.vlgmr.msra.gmra.mxu1 %vm611_vm11, %v911_v8  ;;  %1406 = vmatprep.subr.mxu0 %v1000_v22 }
 0x2b0   : > { %1407 = vmatpush3.msra.mxu0 %v1000_v22 }
 0x362   : > { %v681_v17 = vpop.f32.mrf.mxu1 }
 0x363   : > { %1408 = vmatprep.mubr.msk.f32.mxu0 %vm328_vm0, %v681_v17  ;;  %v1105_v20 = vsel %vm328_vm0, %v681_v17, 0.0 }
 0x364   : > { %v1378_v15 = vpop.f32.mrf.mxu1 }
 0x367   : > { %v786_v14 = vpop.f32.mrf.mxu1 }
 0x368   : > { %1409 = vmatmul.mubr.msk.f32.vlgmr.msra.gmra.mxu0 %vm328_vm0, %v786_v14  ;;  %v1106_v18 = vsel %vm328_vm0, %v786_v14, 0.0 }
 0x369   : > { %v1385_v16 = vpop.f32.mrf.mxu1  ;;  %v1107_v23 = vadd.f32 %v1106_v18, %v1105_v20 }
 0x36b   : > { %v891_v19 = vpop.f32.mrf.mxu1 }
 0x36c   : > { %v1108_v21 = vsel %vm328_vm0, %v891_v19, 0.0  ;;  %1411 = vmatprep.mubr.msk.f32.mxu0 %vm328_vm0, %v891_v19 }
 0x36d   : > { %v1392_v24 = vpop.f32.mrf.mxu1  ;;  %v1109_v26 = vadd.f32 %v1108_v21, %v1107_v23 }
 0x36f   : > { %v996_v25 = vpop.f32.mrf.mxu1 }
 0x370   : > { %1412 = vmatmul.mubr.msk.f32.gmra.mxu0 %vm328_vm0, %v996_v25  ;;  %v1110_v27 = vsel %vm328_vm0, %v996_v25, 0.0 }
 0x371   : > { %v1399_v28 = vpop.f32.mrf.mxu1  ;;  %v1111_v29 = vadd.f32 %v1110_v27, %v1109_v26 }
 0x373   : > { %1112 = vadd.xlane.f32.xlu0 %v1111_v29 }
 0x3fc   : > { %v1113_v30 = vpop.xlane.xlu0 %1112 }
 0x3fd   : > { %v1114_v31 = vrot.slane %v1113_v30, 4 }
 0x3ff   : > { %v1115_v32 = vadd.f32 %v1114_v31, %v1113_v30 }
 0x401   : > { %v1116_v33 = vrot.slane %v1115_v32, 2 }
 0x403   : > { %v1117_v34 = vadd.f32 %v1116_v33, %v1115_v32 }
 0x405   : > { %v1118_v35 = vrot.slane %v1117_v34, 1 }
 0x407   : > { %v1119_v36 = vadd.f32 %v1118_v35, %v1117_v34 }
 0x409   : > { %1422 = vpush %v1119_v36 }
 0x428   : > { %v1410_v37 = vpop.f32.mrf.mxu0 }
 0x429   : > { %1102 = vst.msk [vmem:[%s291_s13 + $0x8] sm:$0xff] %vm328_vm0, %v1410_v37 }
 0x42a   : > { %v1082_v38 = vpop.f32.mrf.mxu0 }
 0x42b   : > { %1101 = vst.msk [vmem:[%s291_s13] sm:$0xff] %vm328_vm0, %v1082_v38 }
 0x430   : > { %v1413_v39 = vpop.f32.mrf.mxu0 }
 0x431   : > { %1104 = vst.msk [vmem:[%s291_s13 + $0x18] sm:$0xff] %vm328_vm0, %v1413_v39 }
 0x432   : > { %v1092_v40 = vpop.f32.mrf.mxu0 }
 0x433   : > { %1103 = vst.msk [vmem:[%s291_s13 + $0x10] sm:$0xff] %vm328_vm0, %v1092_v40 }
 0x43a   : > { %s1423_s14 = spop %1422 }
 0x43b   : > { %s1121_s15 = smul.f32 0.0009765625, %s1423_s14 }
 0x43d   : > { %v1122_v41 = vstv %s1121_s15 }
 0x43e   : > { %v1123_v42 = vsub.f32 %v681_v17, %v1122_v41  ;;  %v1124_v43 = vsub.f32 %v786_v14, %v1122_v41  ;;  %v1125_v44 = vsub.f32 %v891_v19, %v1122_v41  ;;  %v1126_v45 = vsub.f32 %v996_v25, %v1122_v41 }
 0x440   : > { %v1127_v46 = vmul.f32 %v1123_v42, %v1123_v42  ;;  %v1128_v47 = vmul.f32 %v1124_v43, %v1124_v43  ;;  %v1129_v48 = vmul.f32 %v1125_v44, %v1125_v44  ;;  %v1130_v49 = vmul.f32 %v1126_v45, %v1126_v45 }
 0x442   : > { %v1131_v50 = vsel %vm328_vm0, %v1127_v46, 0.0  ;;  %v1132_v51 = vsel %vm328_vm0, %v1128_v47, 0.0  ;;  %v1134_v7 = vsel %vm328_vm0, %v1129_v48, 0.0  ;;  %v1136_v5 = vsel %vm328_vm0, %v1130_v49, 0.0 }
 0x443   : > { %v1133_v52 = vadd.f32 %v1132_v51, %v1131_v50 }
 0x445   : > { %v1135_v53 = vadd.f32 %v1134_v7, %v1133_v52 }
 0x447   : > { %v1137_v54 = vadd.f32 %v1136_v5, %v1135_v53 }
 0x449   : > { %1138 = vadd.xlane.f32.xlu1 %v1137_v54 }
 0x4d2   : > { %v1139_v55 = vpop.xlane.xlu1 %1138 }
 0x4d3   : > { %v1140_v56 = vrot.slane %v1139_v55, 4 }
 0x4d5   : > { %v1141_v57 = vadd.f32 %v1140_v56, %v1139_v55 }
 0x4d7   : > { %v1142_v58 = vrot.slane %v1141_v57, 2 }
 0x4d9   : > { %v1143_v59 = vadd.f32 %v1142_v58, %v1141_v57 }
 0x4db   : > { %v1144_v60 = vrot.slane %v1143_v59, 1 }
 0x4dd   : > { %v1145_v61 = vadd.f32 %v1144_v60, %v1143_v59 }
 0x4df   : > { %1424 = vpush %v1145_v61 }
 0x510   : > { %s1425_s9 = spop %1424 }
 0x511   : > { %v1151_v0 = vstv %s1425_s9 }
 0x512   : > { %v1152_v1 = vsel %vm1150_vm12, %v1151_v0, 0.0 }
 0x513   : > { %v1153_v2 = vsel %vm1149_vm13, %v1122_v41, %v1152_v1 }
 0x514   : > { %1154 = vst [vmem:[%s295_s18] sm:$0x1] %v1153_v2 }
 0x515 PF: > { %s18_s21 = sadd.s32 1, %s1504_s21  }
 0x516   : > { %p15_p2 = scmp.ge.s32.totalorder %s18_s21, 4  }
 0x518   :  { %17 = sbr.rel (!%p15_p2) target bundleno = 1 (0x1), region = 95 }
 0x51d   :  { %1208 = vsyncpa [#allocation3], 1 }
 0x51e   :  { %1210 = vsyncpa [#allocation3 + $0x1], 1 }

// kernel: pool_generator.3
= control target key start
LH: loop header
LB: loop body
LE: loop exit
PB: predicated region body
PF: predicated region fallthrough
CT: control target
= control target key end

     0   :  { %s836_s15 = smov 0   ;;  %s903_s0 = inlined_call_operand.vmem [shape: f32[2,32], index: 0, kind: input, shape index: {}]   ;;  %s904_s1 = inlined_call_operand.vmem [shape: f32[8,16,32], index: 1, kind: input, shape index: {}, may-alias: {1,4}]   ;;  %s905_s2 = inlined_call_operand.vmem [shape: f32[8,16,8], index: 2, kind: input, shape index: {}]   ;;  %s906_s3 = inlined_call_operand.vmem [shape: f32[8,8,32], index: 3, kind: input, shape index: {}]   ;;  %s907_s4 = inlined_call_operand.vmem [shape: f32[8,16,32], index: 4, kind: output, shape index: {}, may-alias: {1,4}]  }
   0x1 LB: > { %s734_s16 = sadd.s32 4294967295, %s809_s15   ;;  %p738_p0 = scmp.ge.s32.totalorder %s809_s15, 1  ;;  %s809_s15 = sphi %s836_s15, %s14_s15  }
   0x2   : > { %p187_p1 = scmp.lt.s32.totalorder %s809_s15, 3 }
   0x4   : > { %p188_p2 = pnand %p738_p0, %p187_p1 }
   0x5   : > { %s739_s17 = sshll.u32 (!%p188_p2), %s734_s16, 2 }
   0x6   : > { %191 = sbr.rel (%p188_p2) target bundleno = 232 (0xe8), region = 36  ;;  %p227_p3 = scmp.lt.s32.totalorder (!%p188_p2), %s739_s17, 7 }
   0xb   : > { %v274_v0 = vlaneseq  ;;  %s909_s17 = smov (!%p227_p3, %s739_s17), 7  ;;  %v273_v2 = vld [vmem:[%s903_s0] sm:$0x3]  ;;  %vm302_vm0 = vcmask 64512   ;;  %vm643_vm5 = vcmask 261120  }
   0xc   : > { %s847_s20 = sshll.u32 %s909_s17, 4  ;;  %s746_s21 = sshll.u32 %s909_s17, 3 }
   0xd   : > { %v275_v1 = vshrl.u32 %v274_v0, 7  ;;  %s244_s24 = scalar_lea.vmem %s906_s3, %s746_s21  ;;  %s856_s27 = scalar_lea.vmem %s905_s2, %s847_s20 }
   0xe   : > { %v269_v7 = vld [vmem:[%s244_s24] sm:$0xff]  ;;  %v270_v8 = vld [vmem:[%s244_s24 + $0x8] sm:$0xff]  ;;  %v271_v9 = vld [vmem:[%s244_s24 + $0x10] sm:$0xff]  ;;  %s231_s30 = scalar_lea.vmem %s904_s1, %s847_s20  ;;  %s882_s7 = scalar_lea.vmem %s907_s4, %s847_s20 }
   0xf   : > { %v276_v3 = vsub.s32 0, %v275_v1  ;;  %v284_v4 = vsub.s32 1, %v275_v1  ;;  %v261_v12 = vld [vmem:[%s856_s27] sm:$0xff]  ;;  %v263_v13 = vld [vmem:[%s856_s27 + $0x10] sm:$0xff]  ;;  %v272_v15 = vld [vmem:[%s244_s24 + $0x18] sm:$0xff] }
  0x10   : > { %777 = vmatprep.mubr.msk.f32.mxu0 %vm302_vm0, %v261_v12  ;;  %782 = vmatprep.mubr.msk.f32.mxu1 %vm302_vm0, %v263_v13  ;;  %v262_v26 = vld [vmem:[%s856_s27 + $0x8] sm:$0xff]  ;;  %v264_v27 = vld [vmem:[%s856_s27 + $0x18] sm:$0xff]  ;;  %v265_v31 = vld [vmem:[%s856_s27 + $0x20] sm:$0xff] }
  0x11   : > { %v277_v5 = vrot.slane %v273_v2, %v276_v3  ;;  %v285_v6 = vrot.slane %v273_v2, %v284_v4  ;;  %v267_v32 = vld [vmem:[%s856_s27 + $0x30] sm:$0xff]  ;;  %v266_v33 = vld [vmem:[%s856_s27 + $0x28] sm:$0xff]  ;;  %v268_v34 = vld [vmem:[%s856_s27 + $0x38] sm:$0xff] }
  0x12   : > { %v254_v35 = vld [vmem:[%s231_s30 + $0x8] sm:$0xff]  ;;  %v256_v37 = vld [vmem:[%s231_s30 + $0x18] sm:$0xff]  ;;  %v253_v41 = vld [vmem:[%s231_s30] sm:$0xff] }
  0x13   : > { %v278_v10 = vmul.f32 %v277_v5, %v269_v7  ;;  %v279_v11 = vmul.f32 %v277_v5, %v270_v8  ;;  %v280_v14 = vmul.f32 %v277_v5, %v271_v9  ;;  %v281_v19 = vmul.f32 %v277_v5, %v272_v15  ;;  %v255_v43 = vld [vmem:[%s231_s30 + $0x10] sm:$0xff]  ;;  %v258_v45 = vld [vmem:[%s231_s30 + $0x28] sm:$0xff]  ;;  %v260_v46 = vld [vmem:[%s231_s30 + $0x38] sm:$0xff] }
  0x14   : > { %v257_v53 = vld [vmem:[%s231_s30 + $0x20] sm:$0xff]  ;;  %v259_v54 = vld [vmem:[%s231_s30 + $0x30] sm:$0xff] }
  0x15   : > { %v286_v16 = vsub.f32 %v278_v10, %v285_v6  ;;  %v287_v17 = vsub.f32 %v279_v11, %v285_v6  ;;  %v288_v18 = vsub.f32 %v280_v14, %v285_v6  ;;  %v289_v23 = vsub.f32 %v281_v19, %v285_v6 }
  0x17   : > { %vm290_vm1 = vcmp.ge.f32.partialorder %v286_v16, 0.0  ;;  %v294_v20 = vmul.f32 0.01, %v286_v16  ;;  %vm291_vm2 = vcmp.ge.f32.partialorder %v287_v17, 0.0  ;;  %v295_v21 = vmul.f32 0.01, %v287_v17 }
  0x18   : > { %vm292_vm3 = vcmp.ge.f32.partialorder %v288_v18, 0.0  ;;  %v296_v22 = vmul.f32 0.01, %v288_v18  ;;  %vm293_vm4 = vcmp.ge.f32.partialorder %v289_v23, 0.0  ;;  %v297_v29 = vmul.f32 0.01, %v289_v23 }
  0x19   : > { %v298_v24 = vsel %vm290_vm1, %v286_v16, %v294_v20  ;;  %v299_v25 = vsel %vm291_vm2, %v287_v17, %v295_v21 }
  0x1a   : > { %775 = vmatprep.subr.mxu0 %v298_v24  ;;  %780 = vmatprep.subr.mxu1 %v299_v25  ;;  %v300_v28 = vsel %vm292_vm3, %v288_v18, %v296_v22  ;;  %v301_v30 = vsel %vm293_vm4, %v289_v23, %v297_v29 }
  0x1b   : > { %776 = vmatpush3.msra.mxu0 %v298_v24  ;;  %781 = vmatpush3.msra.mxu1 %v299_v25 }
  0x1c   : > { %778 = vmatmul.mubr.msk.f32.vlgmr.msra.gmra.mxu0 %vm302_vm0, %v262_v26  ;;  %783 = vmatmul.mubr.msk.f32.vlgmr.msra.gmra.mxu1 %vm302_vm0, %v264_v27 }
  0x1d   : > { %785 = vmatprep.subr.mxu0 %v300_v28  ;;  %790 = vmatprep.subr.mxu1 %v301_v30 }
  0x1e   : > { %786 = vmatpush3.msra.mxu0 %v300_v28  ;;  %791 = vmatpush3.msra.mxu1 %v301_v30 }
  0x1f   : > { %787 = vmatprep.mubr.msk.f32.mxu0 %vm302_vm0, %v265_v31  ;;  %792 = vmatprep.mubr.msk.f32.mxu1 %vm302_vm0, %v267_v32 }
  0x20   : > { %788 = vmatmul.mubr.msk.f32.vlgmr.msra.gmra.mxu0 %vm302_vm0, %v266_v33  ;;  %793 = vmatmul.mubr.msk.f32.vlgmr.msra.gmra.mxu1 %vm302_vm0, %v268_v34 }
  0xdc   : > { %v779_v36 = vpop.f32.mrf.mxu0  ;;  %v784_v38 = vpop.f32.mrf.mxu1 }
  0xdd   : > { %v628_v39 = vmul.f32 0.5, %v779_v36  ;;  %v630_v40 = vmul.f32 0.5, %v784_v38 }
  0xde   : > { %v375_v42 = vpop.f32.mrf.mxu0  ;;  %v456_v44 = vpop.f32.mrf.mxu1 }
  0xdf   : > { %v636_v47 = vadd.f32 %v628_v39, %v254_v35  ;;  %v638_v48 = vadd.f32 %v630_v40, %v256_v37  ;;  %v627_v49 = vmul.f32 0.5, %v375_v42  ;;  %v629_v50 = vmul.f32 0.5, %v456_v44 }
  0xe0   : > { %v789_v51 = vpop.f32.mrf.mxu0  ;;  %v794_v52 = vpop.f32.mrf.mxu1 }
  0xe1   : > { %v635_v55 = vadd.f32 %v627_v49, %v253_v41  ;;  %v637_v56 = vadd.f32 %v629_v50, %v255_v43  ;;  %v632_v57 = vmul.f32 0.5, %v789_v51  ;;  %v634_v58 = vmul.f32 0.5, %v794_v52  ;;  %645 = vst.msk [vmem:[%s882_s7 + $0x8] sm:$0xff] %vm643_vm5, %v636_v47  ;;  %647 = vst.msk [vmem:[%s882_s7 + $0x18] sm:$0xff] %vm643_vm5, %v638_v48 }
  0xe2   : > { %v537_v59 = vpop.f32.mrf.mxu0  ;;  %v618_v60 = vpop.f32.mrf.mxu1 }
  0xe3   : > { %v640_v61 = vadd.f32 %v632_v57, %v258_v45  ;;  %v642_v62 = vadd.f32 %v634_v58, %v260_v46  ;;  %v631_v63 = vmul.f32 0.5, %v537_v59  ;;  %v633_v0 = vmul.f32 0.5, %v618_v60  ;;  %644 = vst.msk [vmem:[%s882_s7] sm:$0xff] %vm643_vm5, %v635_v55  ;;  %646 = vst.msk [vmem:[%s882_s7 + $0x10] sm:$0xff] %vm643_vm5, %v637_v56 }
  0xe5   : > { %649 = vst.msk [vmem:[%s882_s7 + $0x28] sm:$0xff] %vm643_vm5, %v640_v61  ;;  %v639_v1 = vadd.f32 %v631_v63, %v257_v53  ;;  %v641_v2 = vadd.f32 %v633_v0, %v259_v54  ;;  %651 = vst.msk [vmem:[%s882_s7 + $0x38] sm:$0xff] %vm643_vm5, %v642_v62 }
  0xe7   : > { %648 = vst.msk [vmem:[%s882_s7 + $0x20] sm:$0xff] %vm643_vm5, %v639_v1  ;;  %650 = vst.msk [vmem:[%s882_s7 + $0x30] sm:$0xff] %vm643_vm5, %v641_v2 }
  0xe8 PF: > { %s14_s15 = sadd.s32 1, %s809_s15  }
  0xe9   : > { %p11_p4 = scmp.ge.s32.totalorder %s14_s15, 4  }
  0xeb   :  { %13 = sbr.rel (!%p11_p4) target bundleno = 1 (0x1), region = 72 }

</bundles_post_ra>
